<compile_context>
chip_gen: v7x
topology: tpu7x:2x2x1
jax: 0.10.0
libtpu: 0.0.40
codegen_flags: <defaults>
</compile_context>

<pallas_src>
import functools

import jax
import jax.numpy as jnp
from jax.experimental import pallas as pl
from jax.experimental.pallas import tpu as pltpu


def _rnabert_self_output_kernel(h_ref, res_ref, w_ref, vec_ref, o_ref, *, eps):
    """One (tm, H) row tile of: LayerNorm(h @ W + b + residual).

    h_ref:   (tm, H) activations tile
    res_ref: (tm, H) residual (input_tensor) tile
    w_ref:   (H, H)  dense weight, (in, out) layout (nn.Linear weight.T);
                     its dtype selects the MXU mode (bf16 by default)
    vec_ref: (3, H)  packed [dense bias; ln gamma; ln beta] (f32)
    o_ref:   (tm, H) output tile
    """
    w = w_ref[...]
    # Cast activations to the (pre-cast) weight dtype in-kernel; accumulation
    # stays f32 on the MXU.
    h = h_ref[...].astype(w.dtype)
    x = jnp.dot(h, w, preferred_element_type=jnp.float32)

    bias = vec_ref[0:1, :].astype(jnp.float32)
    gamma = vec_ref[1:2, :].astype(jnp.float32)
    beta = vec_ref[2:3, :].astype(jnp.float32)

    x = x + bias
    # Dropout: eval-mode identity.
    x = x + res_ref[...].astype(jnp.float32)

    # LayerNorm over features, f32 on VPU/XLU/EUP.  Single statistics pass:
    # var = E[x^2] - mu^2 (independent reductions pipeline through the XLU).
    inv_h = jnp.float32(1.0 / x.shape[-1])
    s1 = jnp.sum(x, axis=-1, keepdims=True)
    s2 = jnp.sum(x * x, axis=-1, keepdims=True)
    mu = s1 * inv_h
    var = jnp.maximum(s2 * inv_h - mu * mu, 0.0)
    xn = (x - mu) * jax.lax.rsqrt(var + eps)
    o_ref[...] = (gamma * xn + beta).astype(o_ref.dtype)


def _vmem_config():
    """(scoped vmem limit, tile budget) derived from the running chip."""
    phys = 64 * 1024 * 1024                       # conservative default (v7x)
    try:
        phys = int(getattr(pltpu.get_tpu_info(), "vmem_capacity_bytes", phys))
    except Exception:
        pass
    limit = min(phys // 2, 64 * 1024 * 1024)      # 32 MiB on v7x, 64 MiB v5e/v6e
    budget = (limit * 3) // 4                     # headroom for compiler scratch
    return limit, budget


def _pick_tm(M, H, act_itemsize, w_itemsize, *, max_tm, vmem_budget, min_steps=8):
    """Row tile: as big as the VMEM budget allows, but keep a multi-step grid."""
    # Constant-index operands (assume worst-case double buffering as margin).
    resident = 2 * (H * H * w_itemsize + 8 * H * 4)
    # h / residual / out tiles, double-buffered, f32-equivalent compute copies.
    per_row = 2 * 3 * H * max(act_itemsize, 4)
    tm = (vmem_budget - resident) // per_row
    tm = int(max(8, min(max_tm, tm)))
    tm -= tm % 8                                   # sublane aligned
    tm = max(tm, 8)
    # Guarantee >= min_steps grid steps (when M is large enough) so the DMA
    # pipeline overlaps and v7x shards the token axis across both TensorCores.
    rows_per_step = ((pl.cdiv(M, min_steps) + 7) // 8) * 8
    return min(tm, max(rows_per_step, 8))


def rnabert_self_output(hidden_states, input_tensor, params, *, eps=1e-12,
                        matmul_dtype=jnp.bfloat16, max_tm=2048,
                        single_buffer_consts=None):
    """hidden_states, input_tensor: (B, S, H) -> (B, S, H)."""
    B, S, H = hidden_states.shape
    assert input_tensor.shape == (B, S, H)
    M = B * S

    h2d = hidden_states.reshape(M, H)
    r2d = input_tensor.reshape(M, H)

    # Dense weight is nn.Linear weight.T, i.e. (in, out).  Pre-cast once to the
    # MXU dtype (halves its DMA + resident VMEM).  Activations are NOT pre-cast
    # here (that would be an extra un-hidden HBM pass) — they cast in-kernel.
    w = params["dense_w"]
    if matmul_dtype is not None:
        w = w.astype(matmul_dtype)

    # Pack bias / gamma / beta into one (3, H) constant operand.
    vecs = jnp.stack(
        [params["dense_b"], params["ln_w"], params["ln_b"]]).astype(jnp.float32)

    vmem_limit, vmem_budget = _vmem_config()
    tm = _pick_tm(M, H,
                  jnp.dtype(hidden_states.dtype).itemsize,
                  jnp.dtype(w.dtype).itemsize,
                  max_tm=max_tm, vmem_budget=vmem_budget)

    # Ragged last block instead of pad + slice: no extra HBM passes.
    grid = (pl.cdiv(M, tm),)

    # Single-buffer the constant-index operands only at real BERT sizes, where
    # the resident weight footprint actually limits the row tile.
    if single_buffer_consts is None:
        single_buffer_consts = H >= 512

    def const_spec(shape):
        if single_buffer_consts:
            return pl.BlockSpec(shape, lambda i: (0, 0),
                                pipeline_mode=pl.Buffered(1))
        return pl.BlockSpec(shape, lambda i: (0, 0))

    kernel = functools.partial(_rnabert_self_output_kernel, eps=eps)

    out2d = pl.pallas_call(
        kernel,
        out_shape=jax.ShapeDtypeStruct((M, H), hidden_states.dtype),
        grid_spec=pl.GridSpec(
            grid=grid,
            in_specs=[
                pl.BlockSpec((tm, H), lambda i: (i, 0)),   # activations tile
                pl.BlockSpec((tm, H), lambda i: (i, 0)),   # residual tile
                const_spec((H, H)),                        # dense weight
                const_spec((3, H)),                        # [bias; gamma; beta]
            ],
            out_specs=pl.BlockSpec((tm, H), lambda i: (i, 0)),
        ),
        # "parallel" token axis lets v7x shard across its two TensorCores.
        # TODO(synk): if profiling shows only one TC engaged on v7x, switch to
        # pltpu.CORE_PARALLEL / an explicit core_map split.
        compiler_params=pltpu.CompilerParams(
            dimension_semantics=("parallel",),
            vmem_limit_bytes=int(vmem_limit),
        ),
    )(h2d, r2d, w, vecs)

    return out2d.reshape(B, S, H)


def _reference(hidden_states, input_tensor, params, eps=1e-12):
    x = jnp.einsum("bsi,ih->bsh", hidden_states, params["dense_w"]) + params["dense_b"]
    x = x + input_tensor
    u = jnp.mean(x, axis=-1, keepdims=True)
    s = jnp.mean((x - u) ** 2, axis=-1, keepdims=True)
    xn = (x - u) / jnp.sqrt(s + eps)
    return params["ln_w"] * xn + params["ln_b"]


if __name__ == "__main__":
    key = jax.random.PRNGKey(0)
    k1, k2, k3, k4, k5, k6 = jax.random.split(key, 6)

    # Small shapes consistent with the module: batch=2, seq=8, hidden=128
    # (hidden chosen lane-dense; the kernel also works for any H).
    B, S, H = 2, 8, 128
    hidden_states = jax.random.normal(k1, (B, S, H), dtype=jnp.float32)
    input_tensor = jax.random.normal(k2, (B, S, H), dtype=jnp.float32)

    # Deterministic synthetic parameters (dense_w is nn.Linear weight transposed).
    params = {
        "dense_w": jax.random.normal(k3, (H, H), dtype=jnp.float32) * 0.02,
        "dense_b": jax.random.normal(k4, (H,), dtype=jnp.float32) * 0.02,
        "ln_w": jnp.ones((H,), dtype=jnp.float32),
        "ln_b": jnp.zeros((H,), dtype=jnp.float32),
    }

    ref = _reference(hidden_states, input_tensor, params)

    # Exact (f32 matmul) path: tight tolerance.
    out_f32 = rnabert_self_output(hidden_states, input_tensor, params,
                                  matmul_dtype=None)
    out_f32 = jax.block_until_ready(out_f32)
    assert out_f32.shape == (B, S, H)
    assert jnp.allclose(out_f32, ref, atol=5e-5, rtol=5e-5), (
        f"f32 path max abs err = {jnp.max(jnp.abs(out_f32 - ref))}")

    # Default (bf16-MXU) path: looser tolerance from bf16 matmul operands.
    out = rnabert_self_output(hidden_states, input_tensor, params)
    out = jax.block_until_ready(out)
    assert out.shape == (B, S, H)
    assert jnp.allclose(out, ref, atol=2e-2, rtol=2e-2), (
        f"bf16 path max abs err = {jnp.max(jnp.abs(out - ref))}")

    # Ragged-grid case (M not a multiple of the row tile): exercises the
    # pad-free partial last block.
    B2, S2 = 3, 7
    h2 = jax.random.normal(k5, (B2, S2, H), dtype=jnp.float32)
    r2 = jax.random.normal(k6, (B2, S2, H), dtype=jnp.float32)
    ref2 = _reference(h2, r2, params)
    out2 = jax.block_until_ready(rnabert_self_output(h2, r2, params))
    assert out2.shape == (B2, S2, H)
    assert jnp.allclose(out2, ref2, atol=2e-2, rtol=2e-2), (
        f"ragged bf16 path max abs err = {jnp.max(jnp.abs(out2 - ref2))}")

    print("KERNEL_OK")
</pallas_src>

<mosaic_0001>
module attributes {stable_mosaic.version = 11 : i64} {
  func.func @_rnabert_self_output_kernel(%arg0: i32, %arg1: memref<8x128xf32, #tpu.memory_space<vmem>>, %arg2: memref<8x128xf32, #tpu.memory_space<vmem>>, %arg3: memref<128x128xf32, #tpu.memory_space<vmem>>, %arg4: memref<3x128xf32, #tpu.memory_space<vmem>>, %arg5: memref<8x128xf32, #tpu.memory_space<vmem>>) attributes {dimension_semantics = [#tpu.dimension_semantics<parallel>], iteration_bounds = array<i64: 2>, scalar_prefetch = 0 : i64, scratch_operands = 0 : i64, tpu.core_type = #tpu.core_type<tc>, window_params = [{transform_indices = @transform_0, window_bounds = array<i64: 8, 128>}, {transform_indices = @transform_1, window_bounds = array<i64: 8, 128>}, {pipeline_mode = #tpu.pipeline_mode<synchronous>, transform_indices = @transform_2, window_bounds = array<i64: 128, 128>}, {pipeline_mode = #tpu.pipeline_mode<synchronous>, transform_indices = @transform_3, window_bounds = array<i64: 3, 128>}, {transform_indices = @transform_4, window_bounds = array<i64: 8, 128>}]} {
    %c0 = arith.constant 0 : index
    %c0_0 = arith.constant 0 : index
    %0 = vector.load %arg3[%c0, %c0_0] : memref<128x128xf32, #tpu.memory_space<vmem>>, vector<128x128xf32>
    %c0_1 = arith.constant 0 : index
    %c0_2 = arith.constant 0 : index
    %1 = vector.load %arg1[%c0_1, %c0_2] : memref<8x128xf32, #tpu.memory_space<vmem>>, vector<8x128xf32>
    %cst = arith.constant dense<0.000000e+00> : vector<8x128xf32>
    %2 = tpu.matmul %1, %0, %cst {dimension_numbers = #tpu.dot_dimension_numbers<[1], [0], [0], [1], [0, 0, 1, 1], [], []>} : vector<8x128xf32>, vector<128x128xf32>, vector<8x128xf32> -> vector<8x128xf32>
    %c0_3 = arith.constant 0 : index
    %c0_4 = arith.constant 0 : index
    %3 = vector.load %arg4[%c0_3, %c0_4] : memref<3x128xf32, #tpu.memory_space<vmem>>, vector<1x128xf32>
    %c1 = arith.constant 1 : index
    %c0_5 = arith.constant 0 : index
    %4 = vector.load %arg4[%c1, %c0_5] : memref<3x128xf32, #tpu.memory_space<vmem>>, vector<1x128xf32>
    %c2 = arith.constant 2 : index
    %c0_6 = arith.constant 0 : index
    %5 = vector.load %arg4[%c2, %c0_6] : memref<3x128xf32, #tpu.memory_space<vmem>>, vector<1x128xf32>
    %6 = vector.broadcast %3 : vector<1x128xf32> to vector<8x128xf32>
    %7 = arith.addf %2, %6 : vector<8x128xf32>
    %c0_7 = arith.constant 0 : index
    %c0_8 = arith.constant 0 : index
    %8 = vector.load %arg2[%c0_7, %c0_8] : memref<8x128xf32, #tpu.memory_space<vmem>>, vector<8x128xf32>
    %9 = arith.addf %7, %8 : vector<8x128xf32>
    %cst_9 = arith.constant dense<0.000000e+00> : vector<8xf32>
    %10 = vector.multi_reduction <add>, %9, %cst_9 [1] : vector<8x128xf32> to vector<8xf32>
    %11 = vector.shape_cast %10 : vector<8xf32> to vector<8x1xf32>
    %12 = arith.mulf %9, %9 : vector<8x128xf32>
    %cst_10 = arith.constant dense<0.000000e+00> : vector<8xf32>
    %13 = vector.multi_reduction <add>, %12, %cst_10 [1] : vector<8x128xf32> to vector<8xf32>
    %14 = vector.shape_cast %13 : vector<8xf32> to vector<8x1xf32>
    %cst_11 = arith.constant 7.812500e-03 : f32
    %15 = vector.broadcast %cst_11 : f32 to vector<8x1xf32>
    %16 = arith.mulf %11, %15 : vector<8x1xf32>
    %cst_12 = arith.constant 7.812500e-03 : f32
    %17 = vector.broadcast %cst_12 : f32 to vector<8x1xf32>
    %18 = arith.mulf %14, %17 : vector<8x1xf32>
    %19 = arith.mulf %16, %16 : vector<8x1xf32>
    %20 = arith.subf %18, %19 : vector<8x1xf32>
    %cst_13 = arith.constant 0.000000e+00 : f32
    %21 = vector.broadcast %cst_13 : f32 to vector<8x1xf32>
    %22 = arith.maximumf %20, %21 : vector<8x1xf32>
    %23 = vector.broadcast %16 : vector<8x1xf32> to vector<8x128xf32>
    %24 = arith.subf %9, %23 : vector<8x128xf32>
    %cst_14 = arith.constant 9.99999996E-13 : f32
    %25 = vector.broadcast %cst_14 : f32 to vector<8x1xf32>
    %26 = arith.addf %22, %25 : vector<8x1xf32>
    %27 = math.rsqrt %26 : vector<8x1xf32>
    %28 = vector.broadcast %27 : vector<8x1xf32> to vector<8x128xf32>
    %29 = arith.mulf %24, %28 : vector<8x128xf32>
    %30 = vector.broadcast %4 : vector<1x128xf32> to vector<8x128xf32>
    %31 = arith.mulf %30, %29 : vector<8x128xf32>
    %32 = vector.broadcast %5 : vector<1x128xf32> to vector<8x128xf32>
    %33 = arith.addf %31, %32 : vector<8x128xf32>
    %c0_15 = arith.constant 0 : index
    %c0_16 = arith.constant 0 : index
    %34 = vector.load %arg5[%c0_15, %c0_16] : memref<8x128xf32, #tpu.memory_space<vmem>>, vector<8x128xf32>
    tpu.vector_store %arg5[%c0_15, %c0_16], %33 {strides = array<i32>} : memref<8x128xf32, #tpu.memory_space<vmem>>, vector<8x128xf32>,
    return
  }
  func.func @transform_0(%arg0: i32) -> (i32, i32) {
    %c0_i32 = arith.constant 0 : i32
    %c0_i32_0 = arith.constant 0 : i32
    return %arg0, %c0_i32 : i32, i32
  }
  func.func @transform_1(%arg0: i32) -> (i32, i32) {
    %c0_i32 = arith.constant 0 : i32
    %c0_i32_0 = arith.constant 0 : i32
    return %arg0, %c0_i32 : i32, i32
  }
  func.func @transform_2(%arg0: i32) -> (i32, i32) {
    %c0_i32 = arith.constant 0 : i32
    %c0_i32_0 = arith.constant 0 : i32
    %c0_i32_1 = arith.constant 0 : i32
    return %c0_i32, %c0_i32_0 : i32, i32
  }
  func.func @transform_3(%arg0: i32) -> (i32, i32) {
    %c0_i32 = arith.constant 0 : i32
    %c0_i32_0 = arith.constant 0 : i32
    %c0_i32_1 = arith.constant 0 : i32
    return %c0_i32, %c0_i32_0 : i32, i32
  }
  func.func @transform_4(%arg0: i32) -> (i32, i32) {
    %c0_i32 = arith.constant 0 : i32
    %c0_i32_0 = arith.constant 0 : i32
    return %arg0, %c0_i32 : i32, i32
  }
}

</mosaic_0001>

<bundles_post_ra>
// kernel: tpu_custom_call.1
= control target key start
LH: loop header
LB: loop body
LE: loop exit
PB: predicated region body
PF: predicated region fallthrough
CT: control target
= control target key end

     0   :  { %s1112_s0 = inlined_call_operand.hbm [shape: f32[16,128], index: 0, kind: input, shape index: {}]   ;;  %s1113_s1 = inlined_call_operand.hbm [shape: f32[16,128], index: 1, kind: input, shape index: {}]   ;;  %s1114_s2 = inlined_call_operand.hbm [shape: f32[128,128], index: 2, kind: input, shape index: {}]   ;;  %s1115_s3 = inlined_call_operand.vmem [shape: f32[3,128], index: 3, kind: input, shape index: {}]   ;;  %s1116_s4 = inlined_call_operand.hbm [shape: f32[16,128], index: 4, kind: output, shape index: {}]  }
   0x1   :  { %1121 = sst [smem:[#allocation13_spill]] %s1114_s2 }
   0x2   :  { %9 = vsyncpa [#allocation3], 0 }
   0x3   :  { %11 = vsyncpa [#allocation3 + $0x1], 0 }
   0x4   :  { %12 = vsyncpa [#allocation6], 0 }
   0x5   :  { %14 = vsyncpa [#allocation6 + $0x1], 0 }
   0x6   :  { %15 = vsyncpa [#allocation4], 0 }
   0x7   :  { %17 = vsyncpa [#allocation4 + $0x1], 0  ;;  %s864_s15 = smov 0   ;;  %s866_s16 = smov 0  }
   0x8   :  { %s868_s17 = smov 0   ;;  %s870_s18 = smov 0  }
   0x9 LB: > { %s885_s19 = sadd.s32 4294967295, %s828_s18   ;;  %s501_s20 = sadd.s32 4294967294, %s828_s18   ;;  %s828_s18 = sphi %s870_s18, %s1140_s18   ;;  %s824_s17 = sphi %s868_s17, %s1139_s17   ;;  %s820_s16 = sphi %s866_s16, %s1138_s16   ;;  %s816_s15 = sphi %s864_s15, %s1137_s15  }
   0xa   : > { %p43_p0 = scmp.ne.s32.totalorder %s820_s16, %s816_s15  ;;  %p1117_p1 = scmp.eq.s32.totalorder %s885_s19, 0 }
   0xb   : > { %p141_p3 = scmp.eq.s32.totalorder %s501_s20, 1  ;;  %p502_p5 = scmp.ge.s32.totalorder %s828_s18, 1 }
   0xc   : > { %p894_p4 = por %p1117_p1, %p43_p0  ;;  %p148_p7 = scmp.lt.s32.totalorder %s828_s18, 3 }
   0xd   : > { %p899_p6 = por %p141_p3, %p43_p0  ;;  %s830_s24 = smov [#allocation7]  }
   0xe   : > { %s1122_s21 = scalar_select %p894_p4, 1, 0 }
   0xf   : > { %s1123_s22 = scalar_select %p899_p6, 1, 0 }
  0x10   : > { %p904_p8 = pnand %p502_p5, %p148_p7  ;;  %s160_s25 = sshll.u32 %s830_s24, 4  ;;  %s908_s25 = int_to_ptr.vmem [resolvable:$true] %s160_s25 }
  0x11   : > { %s920_s27 = sadd.s32 1, %s828_s18   ;;  %s30_s28 = sadd.s32 1, %s824_s17 }
  0x12   : > { %s1124_s23 = scalar_select %p904_p8, 1, 0 }
  0x13   : > { %p607_p9 = pneg %p904_p8  ;;  %s27_s29 = ssub.s32 %s828_s18, %s920_s27 }
  0x14   : > { %s1126_s2 = sld [smem:[#allocation13_spill]] }
  0x15   : > { %p915_p11 = pnand %p607_p9, %p1117_p1 }
  0x17   : > { %p668_p13 = pneg %p915_p11 }
  0x1a   : > { %s666_s6 = scalar_lea.hbm %s1126_s2, 2048 }
  0x1b   : > { %p667_p12 = scmp.ne.s32.totalorder %s1126_s2, %s666_s6  ;;  %p673_p5 = scmp.lt.u32.totalorder %s666_s6, %s1126_s2 }
  0x1d   : > { %p669_p0 = pnand %p668_p13, %p667_p12 }
  0x1f   : > { %p670_p3 = pneg %p669_p0 }
  0x21   : > { %p675_p7 = pnand %p673_p5, %p670_p3 }
  0x23   : > { %678 = shalt.err (!%p675_p7)
}
  0x24   : > { %s679_s11 = scalar_lea.vmem %s908_s25, 2048  ;;  %p687_p2 = scmp.lt.s32.totalorder %s908_s25, %s908_s25 }
  0x25   : > { %p680_p9 = scmp.ne.s32.totalorder %s908_s25, %s679_s11  ;;  %p688_p6 = scmp.lt.s32.totalorder %s679_s11, %s679_s11 }
  0x27   : > { %p682_p10 = pnand %p680_p9, %p668_p13  ;;  %p689_p4 = por %p688_p6, %p687_p2 }
  0x29   : > { %p683_p1 = pneg %p682_p10 }
  0x2b   : > { %p690_p8 = pnand %p689_p4, %p683_p1 }
  0x2d   : > { %693 = shalt.err (!%p690_p8)
}
  0x2e   : > { %s831_s12 = smov 128   ;;  %s832_s13 = smov 8  }
  0x2f   : > { %610 = dma.hbm_to_vmem [thread:$0]  (!%p915_p11), %s1126_s2, 2048, %s908_s25, [#allocation6], %s831_s12, %s831_s12, %s832_s13  }
  0x30   : > { %p28_p2 = scmp.eq.s32.totalorder %s27_s29, 0  ;;  %p37_p1 = scmp.ne.s32.totalorder %s824_s17, %s820_s16 }
  0x31   : > { %p38_p4 = scmp.eq.s32.totalorder %s828_s18, 0  ;;  %p623_p6 = scmp.lt.s32.totalorder %s828_s18, 2 }
  0x32   : > { %s951_s24 = scalar_select %p28_p2, %s824_s17, %s30_s28  }
  0x33   : > { %p39_p8 = por %p38_p4, %p37_p1  ;;  %p1127_p10 = scmp.eq.s32.totalorder %s885_s19, 1 }
  0x34   : > { %s177_s5 = sand.u32 1, %s824_s17   ;;  %s506_s6 = sshll.u32 %s828_s18, 7 }
  0x35   : > { %p955_p12 = por %p1127_p10, %p37_p1  ;;  %s961_s7 = sshll.u32 %s177_s5, 3 }
  0x36   : > { %s966_s25 = scalar_lea.hbm %s1112_s0, %s506_s6  ;;  %s181_s28 = scalar_lea.vmem [#allocation2], %s961_s7 }
  0x37   : > { %s1128_s30 = scalar_select %p955_p12, 1, 0 }
  0x38   : > { %s188_s29 = sshll.u32 %s181_s28, 4  ;;  %p969_p11 = pnand %p623_p6, %p39_p8  ;;  %s973_s29 = int_to_ptr.vmem [resolvable:$true] %s188_s29 }
  0x39   : > { %s978_s12 = scalar_lea.hbm %s1113_s1, %s506_s6  ;;  %s178_s13 = scalar_lea.sflag [#allocation3], %s177_s5 }
  0x3a   : > { %s694_s14 = scalar_lea.hbm %s966_s25, 128  ;;  %p696_p0 = pneg %p969_p11 }
  0x3b   : > { %p695_p13 = scmp.ne.s32.totalorder %s966_s25, %s694_s14  ;;  %s699_s8 = scalar_lea.hbm %s1112_s0, 256 }
  0x3c   : > { %p700_p7 = scmp.lt.u32.totalorder %s966_s25, %s1112_s0  ;;  %p701_p9 = scmp.lt.u32.totalorder %s699_s8, %s694_s14 }
  0x3d   : > { %p697_p3 = pnand %p696_p0, %p695_p13  ;;  %p703_p1 = scmp.lt.u32.totalorder %s694_s14, %s966_s25 }
  0x3e   : > { %p702_p2 = por %p701_p9, %p700_p7 }
  0x3f   : > { %p698_p5 = pneg %p697_p3 }
  0x40   : > { %p704_p4 = por %p703_p1, %p702_p2 }
  0x42   : > { %p705_p6 = pnand %p704_p4, %p698_p5 }
  0x44   : > { %708 = shalt.err (!%p705_p6)
}
  0x45   : > { %s709_s5 = scalar_lea.vmem %s973_s29, 128  ;;  %s833_s6 = smov [#allocation2]  }
  0x46   : > { %p710_p8 = scmp.ne.s32.totalorder %s973_s29, %s709_s5  ;;  %s714_s10 = sshll.u32 %s833_s6, 4  ;;  %s715_s10 = int_to_ptr.vmem [resolvable:$false] %s714_s10 }
  0x47   : > { %s716_s2 = scalar_lea.vmem %s715_s10, 256  ;;  %p717_p3 = scmp.lt.s32.totalorder %s973_s29, %s715_s10 }
  0x48   : > { %p712_p10 = pnand %p710_p8, %p696_p0  ;;  %p718_p7 = scmp.lt.s32.totalorder %s716_s2, %s709_s5 }
  0x4a   : > { %p713_p13 = pneg %p712_p10  ;;  %p719_p9 = por %p718_p7, %p717_p3 }
  0x4c   : > { %p720_p2 = pnand %p719_p9, %p713_p13 }
  0x4e   : > { %723 = shalt.err (!%p720_p2)
}
  0x4f   : > { %614 = dma.hbm_to_vmem [thread:$0]  (!%p969_p11), %s966_s25, 128, %s973_s29, %s178_s13  }
  0x50   : > { %s195_s11 = sand.u32 1, %s828_s18   ;;  %s199_s14 = scalar_lea.vmem [#allocation5], %s961_s7 }
  0x51   : > { %s206_s20 = sshll.u32 %s199_s14, 4  ;;  %s196_s26 = scalar_lea.sflag [#allocation6], %s195_s11  ;;  %s207_s20 = int_to_ptr.vmem [resolvable:$true] %s206_s20 }
  0x52   : > { %s724_s8 = scalar_lea.hbm %s978_s12, 128  ;;  %s729_s6 = scalar_lea.hbm %s1113_s1, 256 }
  0x53   : > { %p725_p5 = scmp.ne.s32.totalorder %s978_s12, %s724_s8  ;;  %p730_p6 = scmp.lt.u32.totalorder %s978_s12, %s1113_s1 }
  0x54   : > { %p731_p8 = scmp.lt.u32.totalorder %s729_s6, %s724_s8  ;;  %p733_p13 = scmp.lt.u32.totalorder %s724_s8, %s978_s12 }
  0x55   : > { %p727_p1 = pnand %p725_p5, %p696_p0 }
  0x56   : > { %p732_p10 = por %p731_p8, %p730_p6 }
  0x57   : > { %p728_p4 = pneg %p727_p1 }
  0x58   : > { %p734_p3 = por %p733_p13, %p732_p10 }
  0x5a   : > { %p735_p7 = pnand %p734_p3, %p728_p4 }
  0x5c   : > { %738 = shalt.err (!%p735_p7)
}
  0x5d   : > { %s739_s7 = scalar_lea.vmem %s207_s20, 128  ;;  %s834_s25 = smov [#allocation5]  }
  0x5e   : > { %p740_p9 = scmp.ne.s32.totalorder %s207_s20, %s739_s7  ;;  %s744_s29 = sshll.u32 %s834_s25, 4  ;;  %s745_s29 = int_to_ptr.vmem [resolvable:$false] %s744_s29 }
  0x5f   : > { %s746_s13 = scalar_lea.vmem %s745_s29, 256  ;;  %p747_p1 = scmp.lt.s32.totalorder %s207_s20, %s745_s29 }
  0x60   : > { %p742_p2 = pnand %p740_p9, %p696_p0  ;;  %p748_p12 = scmp.lt.s32.totalorder %s746_s13, %s739_s7 }
  0x62   : > { %p743_p5 = pneg %p742_p2  ;;  %p749_p6 = por %p748_p12, %p747_p1 }
  0x64   : > { %p750_p8 = pnand %p749_p6, %p743_p5 }
  0x66   : > { %753 = shalt.err (!%p750_p8)
}
  0x67   : > { %617 = dma.hbm_to_vmem [thread:$0]  (!%p969_p11), %s978_s12, 128, %s207_s20, %s196_s26  }
  0x68   : > { %p1130_p4 = scmp.ne.s32.totalorder %s1124_s23, 0 }
  0x69   : > { %s1029_s11 = sand.u32 (!%p1130_p4), 1, %s820_s16   ;;  %p1131_p12 = scmp.ne.s32.totalorder (!%p1130_p4), %s1122_s21, 0 }
  0x6a   : > { %215 = sbr.rel (%p1130_p4) target bundleno = 555 (0x22b), region = 36  ;;  %s1032_s14 = sshll.u32 (!%p1130_p4), %s1029_s11, 3 }
  0x6b   : > { %s218_s8 = scalar_lea.sflag (!%p1130_p4), [#allocation3], %s1029_s11  ;;  %s221_s28 = scalar_lea.vmem (!%p1130_p4), [#allocation2], %s1032_s14 }
  0x71   : > { %799 = dma.done.wait (%p1131_p12), %s218_s8, 128  }
  0x72   : > { %801 = vsyncadd (%p1131_p12), %s218_s8, 4294967168  ;;  %s226_s23 = sand.u32 1, %s885_s19   ;;  %s230_s12 = scalar_lea.vmem [#allocation5], %s1032_s14 }
  0x73   : > { %s227_s9 = scalar_lea.sflag [#allocation6], %s226_s23 }
  0x74   : > { %803 = dma.done.wait (%p1131_p12), %s227_s9, 128  }
  0x75   : > { %805 = vsyncadd (%p1131_p12), %s227_s9, 4294967168  ;;  %p1132_p11 = scmp.eq.s32.totalorder %s885_s19, 0 }
  0x77   : > { %807 = dma.done.wait (%p1132_p11), [#allocation6], 2048   ;;  %p1133_p0 = pmov %p1132_p11 }
  0x78   : > { %v835_v0 = vmov 0.0|0.0   ;;  %vm836_vm0 = vmmov 0   ;;  %v837_v1 = vmov 0.0   ;;  %v264_v2 = vld [vmem:[#allocation7] sm:$0xff]  ;;  %v265_v3 = vld [vmem:[#allocation7 + $0x8] sm:$0xff]  ;;  %v266_v4 = vld [vmem:[#allocation7 + $0x10] sm:$0xff] }
  0x79   : > { %809 = vsyncadd (%p1133_p0), [#allocation6], 4294965248  ;;  %573 = vmatprep.subr.bf16.mxu0 %v835_v0  ;;  %570 = vmatprep.mubr.msk.f32.mxu0 %vm836_vm0, %v837_v1  ;;  %v574_v5 = vpack.c.bf16 %v265_v3, %v264_v2  ;;  %v267_v6 = vld [vmem:[#allocation7 + $0x18] sm:$0xff]  ;;  %v268_v8 = vld [vmem:[#allocation7 + $0x20] sm:$0xff]  ;;  %s518_s2 = sshll.u32 %s885_s19, 7  ;;  %s263_s7 = scalar_lea.vmem [#allocation8], %s1032_s14 }
  0x7a   : > { %v577_v7 = vpack.c.bf16 %v267_v6, %v266_v4  ;;  %v269_v9 = vld [vmem:[#allocation7 + $0x28] sm:$0xff]  ;;  %v270_v11 = vld [vmem:[#allocation7 + $0x30] sm:$0xff]  ;;  %v271_v12 = vld [vmem:[#allocation7 + $0x38] sm:$0xff]  ;;  %s399_s25 = sshll.u32 %s263_s7, 4  ;;  %s1068_s8 = scalar_lea.hbm %s1116_s4, %s518_s2  ;;  %s1070_s25 = int_to_ptr.vmem [resolvable:$true] %s399_s25 }
  0x7b   : > { %575 = vmatpush3.bf16.msra.mxu0 %v574_v5  ;;  %v580_v10 = vpack.c.bf16 %v269_v9, %v268_v8  ;;  %v583_v13 = vpack.c.bf16 %v271_v12, %v270_v11  ;;  %v272_v14 = vld [vmem:[#allocation7 + $0x40] sm:$0xff]  ;;  %v273_v15 = vld [vmem:[#allocation7 + $0x48] sm:$0xff]  ;;  %v274_v17 = vld [vmem:[#allocation7 + $0x50] sm:$0xff]  ;;  %s754_s23 = scalar_lea.vmem %s1070_s25, 128  ;;  %p1134_p13 = scmp.ne.s32.totalorder %s1128_s30, 0 }
  0x7c   : > { %576 = vmatprep.subr.bf16.mxu0 %v835_v0  ;;  %v586_v16 = vpack.c.bf16 %v273_v15, %v272_v14  ;;  %v275_v18 = vld [vmem:[#allocation7 + $0x58] sm:$0xff]  ;;  %v276_v20 = vld [vmem:[#allocation7 + $0x60] sm:$0xff]  ;;  %v277_v21 = vld [vmem:[#allocation7 + $0x68] sm:$0xff]  ;;  %p755_p10 = scmp.ne.s32.totalorder %s1070_s25, %s754_s23  ;;  %s838_s19 = smov [#allocation8]  }
  0x7d   : > { %v589_v19 = vpack.c.bf16 %v275_v18, %v274_v17  ;;  %v592_v22 = vpack.c.bf16 %v277_v21, %v276_v20  ;;  %v278_v23 = vld [vmem:[#allocation7 + $0x70] sm:$0xff]  ;;  %v279_v24 = vld [vmem:[#allocation7 + $0x78] sm:$0xff]  ;;  %v280_v26 = vld [vmem:[%s221_s28] sm:$0xff]  ;;  %s386_s28 = scalar_lea.sflag [#allocation4], %s1029_s11  ;;  %s758_s14 = sshll.u32 %s838_s19, 4  ;;  %s759_s14 = int_to_ptr.vmem [resolvable:$false] %s758_s14 }
  0x7e   : > { %v595_v25 = vpack.c.bf16 %v279_v24, %v278_v23  ;;  %v514_v27 = vld [vmem:[%s1115_s3] ss:$0 sm:$0xff]  ;;  %v358_v29 = vld [vmem:[%s230_s12] sm:$0xff]  ;;  %v515_v44 = vld [vmem:[%s1115_s3 + $0x1] ss:$0 sm:$0xff]  ;;  %p756_p3 = pnand %p755_p10, %p1134_p13  ;;  %s760_s9 = scalar_lea.vmem %s759_s14, 256 }
  0x7f   : > { %578 = vmatpush3.bf16.msra.mxu0 %v577_v7  ;;  %v516_v46 = vld [vmem:[%s1115_s3 + $0x2] ss:$0 sm:$0xff]  ;;  %p761_p9 = scmp.lt.s32.totalorder %s1070_s25, %s759_s14  ;;  %p762_p2 = scmp.lt.s32.totalorder %s760_s9, %s754_s23 }
  0x80   : > { %579 = vmatprep.subr.bf16.mxu0 %v835_v0  ;;  %p757_p7 = pneg %p756_p3 }
  0x81   : > { %p763_p5 = por %p762_p2, %p761_p9 }
  0x83   : > { %581 = vmatpush3.bf16.msra.mxu0 %v580_v10  ;;  %p764_p1 = pnand %p763_p5, %p757_p7 }
  0x84   : > { %582 = vmatprep.subr.bf16.mxu0 %v835_v0 }
  0x87   : > { %584 = vmatpush3.bf16.msra.mxu0 %v583_v13 }
  0x88   : > { %585 = vmatprep.subr.bf16.mxu0 %v835_v0 }
  0x8b   : > { %587 = vmatpush3.bf16.msra.mxu0 %v586_v16 }
  0x8c   : > { %588 = vmatprep.subr.bf16.mxu0 %v835_v0 }
  0x8f   : > { %590 = vmatpush3.bf16.msra.mxu0 %v589_v19 }
  0x90   : > { %591 = vmatprep.subr.bf16.mxu0 %v835_v0 }
  0x93   : > { %593 = vmatpush3.bf16.msra.mxu0 %v592_v22 }
  0x94   : > { %594 = vmatprep.subr.bf16.mxu0 %v835_v0 }
  0x97   : > { %596 = vmatpush3.bf16.msra.mxu0 %v595_v25 }
  0x9a   : > { %571 = vmatmul.mubr.f32.vlgmr.msra.gmra.mrb[0].mxu0 %v280_v26 }
 0x16d   : > { %v354_v28 = vpop.f32.mrb[0].mxu0 }
 0x16e   : > { %v355_v30 = vadd.f32 %v514_v27, %v354_v28  ;;  %v572_v31 = vpop.f32.mrb[1].mxu0 }
 0x170   : > { %v359_v32 = vadd.f32 %v358_v29, %v355_v30 }
 0x172   : > { %360 = vadd.xlane.f32.xlu0 %v359_v32  ;;  %v362_v33 = vmul.f32 %v359_v32, %v359_v32 }
 0x176   : > { %363 = vadd.xlane.f32.xlu0 %v362_v33 }
 0x1ff   : > { %v361_v34 = vpop.xlane.xlu0 %360 }
 0x200   : > { %v365_v35 = vmul.f32 0.0078125, %v361_v34 }
 0x202   : > { %v367_v37 = vmul.f32 %v365_v35, %v365_v35  ;;  %v370_v42 = vsub.f32 %v359_v32, %v365_v35 }
 0x203   : > { %v364_v36 = vpop.xlane.xlu0 %363 }
 0x204   : > { %v366_v38 = vmul.f32 0.0078125, %v364_v36 }
 0x206   : > { %v368_v39 = vsub.f32 %v366_v38, %v367_v37 }
 0x208   : > { %v369_v40 = vmax.f32 %v368_v39, 0.0 }
 0x20a   : > { %v371_v41 = vadd.f32 1e-12, %v369_v40 }
 0x20c   : > { %664 = vrsqrt.f32 %v371_v41 }
 0x216   : > { %v665_v43 = vpop.eup %664 }
 0x217   : > { %v373_v45 = vmul.f32 %v665_v43, %v370_v42 }
 0x219   : > { %v378_v47 = vmul.f32 %v515_v44, %v373_v45 }
 0x21b   : > { %v383_v48 = vadd.f32 %v516_v46, %v378_v47 }
 0x21d   : > { %384 = vst [vmem:[%s263_s7] sm:$0xff] %v383_v48 }
 0x21e   : > { %767 = shalt.err (!%p764_p1)
}
 0x21f   : > { %s768_s11 = scalar_lea.hbm %s1068_s8, 128  ;;  %s772_s20 = scalar_lea.hbm %s1116_s4, 256 }
 0x220   : > { %p769_p6 = scmp.ne.s32.totalorder %s1068_s8, %s768_s11  ;;  %p773_p12 = scmp.lt.u32.totalorder %s1068_s8, %s1116_s4 }
 0x221   : > { %p774_p11 = scmp.lt.u32.totalorder %s772_s20, %s768_s11  ;;  %p776_p10 = scmp.lt.u32.totalorder %s768_s11, %s1068_s8 }
 0x222   : > { %p770_p8 = pnand %p769_p6, %p1134_p13 }
 0x223   : > { %p775_p0 = por %p774_p11, %p773_p12 }
 0x224   : > { %p771_p4 = pneg %p770_p8 }
 0x225   : > { %p777_p3 = por %p776_p10, %p775_p0 }
 0x227   : > { %p778_p7 = pnand %p777_p3, %p771_p4 }
 0x229   : > { %781 = shalt.err (!%p778_p7)
}
 0x22a   : > { %605 = dma.vmem_to_hbm [thread:$0]  (%p1134_p13), %s1070_s25, 128, %s1068_s8, %s386_s28  }
 0x22b PF: > { %s411_s6 = sand.u32 1, %s816_s15   ;;  %p1135_p9 = scmp.ne.s32.totalorder %s1123_s22, 0 }
 0x22c   : > { %p1136_p2 = scmp.ge.s32.totalorder %s828_s18, 2  ;;  %s412_s10 = scalar_lea.sflag [#allocation4], %s411_s6 }
 0x22e   : > { %p619_p5 = pnand %p1136_p2, %p1135_p9 }
 0x230   : > { %811 = dma.done.wait (!%p619_p5), %s412_s10, 128  }
 0x231   : > { %813 = vsyncadd (!%p619_p5), %s412_s10, 4294967168  ;;  %p20_p1 = scmp.ge.s32.totalorder %s920_s27, 4   ;;  %s1137_s15 = smov %s820_s16 }
 0x232   : > { %s1138_s16 = smov %s824_s17  ;;  %s1139_s17 = smov %s951_s24 }
 0x233   : > { %s1140_s18 = smov %s920_s27  ;;  %22 = sbr.rel (!%p20_p1) target bundleno = 9 (0x9), region = 98 }
 0x23a   :  { %417 = vsyncpa [#allocation3], 1 }
 0x23b   :  { %419 = vsyncpa [#allocation3 + $0x1], 1 }
 0x23c   :  { %420 = vsyncpa [#allocation6], 1 }
 0x23d   :  { %422 = vsyncpa [#allocation6 + $0x1], 1 }
 0x23e   :  { %423 = vsyncpa [#allocation4], 1 }
 0x23f   :  { %425 = vsyncpa [#allocation4 + $0x1], 1 }

</bundles_post_ra>
